<compile_context>
chip_gen: v7x
topology: tpu7x:2x2x1
jax: 0.10.0
libtpu: 0.0.40
codegen_flags: <defaults>
</compile_context>

<pallas_src>
import jax
import jax.numpy as jnp
from jax.experimental import pallas as pl
from jax.experimental.pallas import tpu as pltpu

# ---------------- configuration (small but semantically consistent) ----------
STYLEGAN_SIZE = 64                              # opts.stylegan_size
UPSAMPLE = 7                                    # nn.Upsample(scale_factor=7), 'nearest'
POOL_K = STYLEGAN_SIZE // 32                    # AvgPool2d kernel (= stride)
CLIP_RES = STYLEGAN_SIZE * UPSAMPLE // POOL_K   # always 224 (CLIP input res)
PATCH = 32                                      # ViT-B/32 patch size
GRID_P = CLIP_RES // PATCH                      # 7 patches per side
N_PATCH = GRID_P * GRID_P                       # 49 patches
N_CHAN = 3
PATCH_DIM = N_CHAN * PATCH * PATCH              # 3072
VISION_WIDTH = 64                               # toy widths (real ViT-B/32 is 768)
TEXT_WIDTH = 64
EMBED_DIM = 32
CONTEXT_LEN = 77
VOCAB = 128
LOGIT_SCALE = 100.0                             # cancels against the /100 in the loss
EPS = 1e-6


# ---------------- kernel A: text tower (one shot, hoisted out of batch grid) --
def _text_tower_kernel(temb_ref, wtxt_ref, txtn_ref):
    # token-embedding mean over the context -> projection -> L2 normalize
    tpool = jnp.sum(temb_ref[...].astype(jnp.float32), axis=1) * (1.0 / CONTEXT_LEN)
    txt_f = jnp.dot(tpool.astype(jnp.bfloat16), wtxt_ref[...],
                    preferred_element_type=jnp.float32)                  # (T, E)
    txtn_ref[...] = txt_f * jax.lax.rsqrt(
        jnp.sum(txt_f * txt_f, axis=-1, keepdims=True) + EPS)


# ---------------- kernel B: fused upsample+avgpool + image tower + loss ------
# Upsample-then-avgpool is separable:  pooled_c = P @ x_c @ P^T,
#   P[u, r] = |{k in [u*K, (u+1)*K) : k // 7 == r}| / K   (exact in bf16).
# S[v, b] = 1 iff v % 32 == b sums the 7 patch-column groups (exact in bf16).
def _clip_fused_kernel(p_ref, s_ref, x_ref, wpat_ref, wimg_ref, txtn_ref, sim_ref):
    p = p_ref[...]                                           # (224, S)   bf16
    x = x_ref[0]                                             # (3, S, S)  bf16

    # ---- avg_pool(upsample(x)): two matmuls, f32 accumulation -----------------
    # tmp[c, s, u] = sum_r x[c, r, s] * P[u, r]
    tmp = jax.lax.dot_general(x, p, (((1,), (1,)), ((), ())),
                              preferred_element_type=jnp.float32)          # (3, S, 224)
    tmp = tmp.astype(jnp.bfloat16)       # accepted bf16 deviation (see header)
    # pooled[c, u, v] = sum_s tmp[c, s, u] * P[v, s]
    pooled = jax.lax.dot_general(tmp, p, (((1,), (1,)), ((), ())),
                                 preferred_element_type=jnp.float32)       # (3, 224, 224)
    pooled = pooled.astype(jnp.bfloat16)

    # ---- mean over the 49 (32x32) patches (linearity: reduce before embed) ----
    # columns: one MXU group-sum matmul; rows: 7 static sublane-slice adds.
    colsum = jax.lax.dot_general(pooled, s_ref[...], (((2,), (0,)), ((), ())),
                                 preferred_element_type=jnp.float32)       # (3, 224, 32)
    acc = colsum[:, 0:PATCH, :]
    for i in range(1, GRID_P):
        acc = acc + colsum[:, i * PATCH:(i + 1) * PATCH, :]
    meanp = acc * (1.0 / N_PATCH)                                          # (3, 32, 32)

    # ---- patch embed on the mean patch -> projection -> L2 normalize ----------
    m2 = meanp.reshape(N_CHAN * PATCH, PATCH).astype(jnp.bfloat16)         # (96, 32)
    h = jax.lax.dot_general(m2, wpat_ref[...], (((1,), (1,)), ((0,), (0,))),
                            preferred_element_type=jnp.float32)            # (96, Dv)
    feat = jnp.sum(h, axis=0, keepdims=True)                               # (1, Dv)
    img_f = jnp.dot(feat.astype(jnp.bfloat16), wimg_ref[...],
                    preferred_element_type=jnp.float32)                    # (1, E)
    img_n = img_f * jax.lax.rsqrt(jnp.sum(img_f * img_f, axis=-1, keepdims=True) + EPS)

    # ---- similarity = 1 - LOGIT_SCALE * cos / 100 = 1 - cos (scale cancels) ---
    cos = jax.lax.dot_general(img_n, txtn_ref[...], (((1,), (1,)), ((), ())),
                              preferred_element_type=jnp.float32)          # (1, T)
    sim_ref[0] = 1.0 - cos


# --------------------------------- wrapper -----------------------------------
def clip_loss_forward(image, text_tokens, params):
    B, C, S, _ = image.shape
    T = text_tokens.shape[0]
    assert C == N_CHAN and S == STYLEGAN_SIZE

    # pooling matrix P (nearest-upsample x7 then avgpool k) — exact in bf16
    u = jnp.arange(S * UPSAMPLE)
    P = (jnp.zeros((CLIP_RES, S), jnp.float32)
         .at[u // POOL_K, u // UPSAMPLE].add(1.0 / POOL_K)).astype(jnp.bfloat16)
    # 0/1 patch-column group-sum matrix — exact in bf16
    Smat = (jnp.arange(CLIP_RES)[:, None] % PATCH
            == jnp.arange(PATCH)[None, :]).astype(jnp.bfloat16)

    x = image.astype(jnp.bfloat16)
    w_patch = params["w_patch"].reshape(N_CHAN * PATCH, PATCH,
                                        VISION_WIDTH).astype(jnp.bfloat16)
    w_img = params["w_img_proj"].astype(jnp.bfloat16)
    w_txt = params["w_txt_proj"].astype(jnp.bfloat16)

    # TODO(synk): the token-embedding gather stays in XLA (no clean Pallas TPU
    #             equivalent short of a manual DMA gather).
    temb = jnp.take(params["tok_emb"], text_tokens, axis=0).astype(jnp.bfloat16)

    # text tower: computed once (hoisted out of the per-image grid)
    txt_n = pl.pallas_call(
        _text_tower_kernel,
        out_shape=jax.ShapeDtypeStruct((T, EMBED_DIM), jnp.float32),
        grid=(1,),
        in_specs=[
            pl.BlockSpec((T, CONTEXT_LEN, TEXT_WIDTH), lambda i: (0, 0, 0)),
            pl.BlockSpec((TEXT_WIDTH, EMBED_DIM), lambda i: (0, 0)),
        ],
        out_specs=pl.BlockSpec((T, EMBED_DIM), lambda i: (0, 0)),
        compiler_params=pltpu.CompilerParams(dimension_semantics=("arbitrary",)),
    )(temb, w_txt)

    # fused pooling + image tower + cosine loss, one image per grid step
    sim = pl.pallas_call(
        _clip_fused_kernel,
        out_shape=jax.ShapeDtypeStruct((B, 1, T), jnp.float32),
        grid=(B,),
        in_specs=[
            pl.BlockSpec((CLIP_RES, S), lambda b: (0, 0)),                 # P (resident)
            pl.BlockSpec((CLIP_RES, PATCH), lambda b: (0, 0)),             # S (resident)
            pl.BlockSpec((1, N_CHAN, S, S), lambda b: (b, 0, 0, 0)),       # one image
            pl.BlockSpec((N_CHAN * PATCH, PATCH, VISION_WIDTH),
                         lambda b: (0, 0, 0)),                             # w_patch
            pl.BlockSpec((VISION_WIDTH, EMBED_DIM), lambda b: (0, 0)),     # w_img
            pl.BlockSpec((T, EMBED_DIM), lambda b: (0, 0)),                # txt_n
        ],
        out_specs=pl.BlockSpec((1, 1, T), lambda b: (b, 0, 0)),
        compiler_params=pltpu.CompilerParams(dimension_semantics=("parallel",)),
    )(P, Smat, x, w_patch, w_img, txt_n)
    return sim.reshape(B, T)


def init_params(key):
    k1, k2, k3, k4 = jax.random.split(key, 4)
    return {
        "w_patch": 0.02 * jax.random.normal(k1, (PATCH_DIM, VISION_WIDTH), jnp.float32),
        "w_img_proj": 0.1 * jax.random.normal(k2, (VISION_WIDTH, EMBED_DIM), jnp.float32),
        "tok_emb": 0.02 * jax.random.normal(k3, (VOCAB, TEXT_WIDTH), jnp.float32),
        "w_txt_proj": 0.1 * jax.random.normal(k4, (TEXT_WIDTH, EMBED_DIM), jnp.float32),
    }


if __name__ == "__main__":
    key = jax.random.PRNGKey(0)
    kp, ki, kt = jax.random.split(key, 3)
    params = init_params(kp)

    B, T = 2, 2
    image = jax.random.normal(ki, (B, N_CHAN, STYLEGAN_SIZE, STYLEGAN_SIZE), jnp.float32)
    text = jax.random.randint(kt, (T, CONTEXT_LEN), 0, VOCAB, dtype=jnp.int32)

    sim = clip_loss_forward(image, text, params)
    sim = jax.block_until_ready(sim)
    assert sim.shape == (B, T) and sim.dtype == jnp.float32
    assert bool(jnp.all(jnp.isfinite(sim)))
    print("KERNEL_OK")
</pallas_src>

<mosaic_0001>
module attributes {stable_mosaic.version = 11 : i64} {
  func.func @_text_tower_kernel(%arg0: i32, %arg1: memref<2x77x64xbf16, #tpu.memory_space<vmem>>, %arg2: memref<64x32xbf16, #tpu.memory_space<vmem>>, %arg3: memref<2x32xf32, #tpu.memory_space<vmem>>) attributes {dimension_semantics = [#tpu.dimension_semantics<arbitrary>], iteration_bounds = array<i64: 1>, scalar_prefetch = 0 : i64, scratch_operands = 0 : i64, tpu.core_type = #tpu.core_type<tc>, window_params = [{pipeline_mode = #tpu.pipeline_mode<synchronous>, transform_indices = @transform_0, window_bounds = array<i64: 2, 77, 64>}, {pipeline_mode = #tpu.pipeline_mode<synchronous>, transform_indices = @transform_1, window_bounds = array<i64: 64, 32>}, {pipeline_mode = #tpu.pipeline_mode<synchronous>, transform_indices = @transform_2, window_bounds = array<i64: 2, 32>}]} {
    %c0 = arith.constant 0 : index
    %c0_0 = arith.constant 0 : index
    %c0_1 = arith.constant 0 : index
    %0 = vector.load %arg1[%c0, %c0_0, %c0_1] : memref<2x77x64xbf16, #tpu.memory_space<vmem>>, vector<2x77x64xbf16>
    %1 = arith.extf %0 : vector<2x77x64xbf16> to vector<2x77x64xf32>
    %cst = arith.constant dense<0.000000e+00> : vector<2x64xf32>
    %2 = vector.multi_reduction <add>, %1, %cst [1] : vector<2x77x64xf32> to vector<2x64xf32>
    %cst_2 = arith.constant 0.012987013 : f32
    %3 = vector.broadcast %cst_2 : f32 to vector<2x64xf32>
    %4 = arith.mulf %2, %3 : vector<2x64xf32>
    %5 = arith.truncf %4 : vector<2x64xf32> to vector<2x64xbf16>
    %c0_3 = arith.constant 0 : index
    %c0_4 = arith.constant 0 : index
    %6 = vector.load %arg2[%c0_3, %c0_4] : memref<64x32xbf16, #tpu.memory_space<vmem>>, vector<64x32xbf16>
    %cst_5 = arith.constant dense<0.000000e+00> : vector<2x32xf32>
    %7 = tpu.matmul %5, %6, %cst_5 {dimension_numbers = #tpu.dot_dimension_numbers<[1], [0], [0], [1], [0, 0, 1, 1], [], []>} : vector<2x64xbf16>, vector<64x32xbf16>, vector<2x32xf32> -> vector<2x32xf32>
    %8 = arith.mulf %7, %7 : vector<2x32xf32>
    %cst_6 = arith.constant dense<0.000000e+00> : vector<2xf32>
    %9 = vector.multi_reduction <add>, %8, %cst_6 [1] : vector<2x32xf32> to vector<2xf32>
    %10 = vector.shape_cast %9 : vector<2xf32> to vector<2x1xf32>
    %cst_7 = arith.constant 9.99999997E-7 : f32
    %11 = vector.broadcast %cst_7 : f32 to vector<2x1xf32>
    %12 = arith.addf %10, %11 : vector<2x1xf32>
    %13 = math.rsqrt %12 : vector<2x1xf32>
    %14 = vector.broadcast %13 : vector<2x1xf32> to vector<2x32xf32>
    %15 = arith.mulf %7, %14 : vector<2x32xf32>
    %c0_8 = arith.constant 0 : index
    %c0_9 = arith.constant 0 : index
    %16 = vector.load %arg3[%c0_8, %c0_9] : memref<2x32xf32, #tpu.memory_space<vmem>>, vector<2x32xf32>
    tpu.vector_store %arg3[%c0_8, %c0_9], %15 {strides = array<i32>} : memref<2x32xf32, #tpu.memory_space<vmem>>, vector<2x32xf32>,
    return
  }
  func.func @transform_0(%arg0: i32) -> (i32, i32, i32) {
    %c0_i32 = arith.constant 0 : i32
    %c0_i32_0 = arith.constant 0 : i32
    %c0_i32_1 = arith.constant 0 : i32
    %c0_i32_2 = arith.constant 0 : i32
    return %c0_i32, %c0_i32_0, %c0_i32_1 : i32, i32, i32
  }
  func.func @transform_1(%arg0: i32) -> (i32, i32) {
    %c0_i32 = arith.constant 0 : i32
    %c0_i32_0 = arith.constant 0 : i32
    %c0_i32_1 = arith.constant 0 : i32
    return %c0_i32, %c0_i32_0 : i32, i32
  }
  func.func @transform_2(%arg0: i32) -> (i32, i32) {
    %c0_i32 = arith.constant 0 : i32
    %c0_i32_0 = arith.constant 0 : i32
    %c0_i32_1 = arith.constant 0 : i32
    return %c0_i32, %c0_i32_0 : i32, i32
  }
}

</mosaic_0001>

<bundles_post_ra>
// kernel: tpu_custom_call.1
= control target key start
LH: loop header
LB: loop body
LE: loop exit
PB: predicated region body
PF: predicated region fallthrough
CT: control target
= control target key end

     0   :  { %v308_v1 = vmov 0.0   ;;  %vm309_vm0 = vmmov 0   ;;  %vm53_vm1 = vcmask 523264   ;;  %s402_s0 = inlined_call_operand.vmem [shape: bf16[2,77,64], index: 0, kind: input, shape index: {}]   ;;  %s403_s1 = inlined_call_operand.vmem [shape: bf16[64,32], index: 1, kind: input, shape index: {}]   ;;  %s404_s2 = inlined_call_operand.hbm [shape: f32[2,32], index: 2, kind: output, shape index: {}]  }
   0x1   :  { %v278_v0 = vld [vmem:[%s403_s1] sm:$0xff]   ;;  %263 = vmatprep.subr.bf16.mxu0 %v308_v1  ;;  %v279_v2 = vld [vmem:[%s403_s1 + $0x8] sm:$0xff]   ;;  %271 = vmatprep.mubr.msk.bf16.mxu0 %vm309_vm0, %v308_v1  ;;  %v280_v5 = vld [vmem:[%s403_s1 + $0x10] sm:$0xff]  }
   0x2   :  { %264 = vmatpush3.bf16.msra.mxu0 %v278_v0  ;;  %v220_v3 = vld [vmem:[%s402_s0] sm:$0xff]   ;;  %v251_v4 = vld [vmem:[%s402_s0 + $0x8] sm:$0xff]   ;;  %v255_v10 = vld [vmem:[%s402_s0 + $0x30] sm:$0xff]  }
   0x3   :  { %265 = vmatprep.subr.bf16.mxu0 %v308_v1  ;;  %v221_v6 = vunpack.c.l.bf16 %v220_v3  ;;  %v222_v7 = vunpack.c.h.bf16 %v220_v3  ;;  %v225_v8 = vunpack.c.l.bf16 %v251_v4  ;;  %v254_v9 = vld [vmem:[%s402_s0 + $0x28] sm:$0xff]   ;;  %v252_v11 = vld [vmem:[%s402_s0 + $0x10] sm:$0xff]  }
   0x6   :  { %266 = vmatpush3.bf16.msra.mxu0 %v279_v2 }
   0x7   :  { %267 = vmatprep.subr.bf16.mxu0 %v308_v1 }
   0x8   :  { %7 = vsyncpa [#allocation3], 0  ;;  %v226_v12 = vunpack.c.h.bf16 %v251_v4  ;;  %v237_v13 = vunpack.c.l.bf16 %v254_v9  ;;  %v238_v14 = vunpack.c.h.bf16 %v254_v9  ;;  %v241_v15 = vunpack.c.l.bf16 %v255_v10  ;;  %v281_v16 = vld [vmem:[%s403_s1 + $0x18] sm:$0xff]   ;;  %v257_v33 = vld [vmem:[%s402_s0 + $0x40] sm:$0xff]  }
   0x9   :  { %v229_v17 = vunpack.c.l.bf16 %v252_v11  ;;  %v256_v18 = vld [vmem:[%s402_s0 + $0x38] sm:$0xff]   ;;  %v54_v19 = vsel %vm53_vm1, %v221_v6, 0.0  ;;  %v55_v20 = vsel %vm53_vm1, %v222_v7, 0.0  ;;  %v57_v21 = vsel %vm53_vm1, %v225_v8, 0.0  ;;  %v21_v36 = vld [vmem:[%s402_s0 + $0x20] ss:$40 sps:$4 sm:$0xff]  }
   0xa   :  { %268 = vmatpush3.bf16.msra.mxu0 %v280_v5  ;;  %v253_v22 = vld [vmem:[%s402_s0 + $0x18] sm:$0xff]   ;;  %v242_v23 = vunpack.c.h.bf16 %v255_v10  ;;  %v56_v24 = vadd.f32 %v55_v20, %v54_v19  ;;  %v230_v25 = vunpack.c.h.bf16 %v252_v11  ;;  %v59_v26 = vsel %vm53_vm1, %v226_v12, 0.0  ;;  %v22_v43 = vld [vmem:[%s402_s0 + $0x24] sm:$0x7]  ;;  %v32_v53 = vld [vmem:[%s402_s0 + $0x4c] sm:$0x7] }
   0xb   :  { %269 = vmatprep.subr.bf16.mxu0 %v308_v1  ;;  %v80_v27 = vsel %vm53_vm1, %v237_v13, 0.0  ;;  %v245_v28 = vunpack.c.l.bf16 %v256_v18  ;;  %v81_v30 = vsel %vm53_vm1, %v238_v14, 0.0  ;;  %v83_v31 = vsel %vm53_vm1, %v241_v15, 0.0  ;;  %s310_s0 = smov [#allocation2]  }
   0xc   :  { %v58_v29 = vadd.f32 %v57_v21, %v56_v24  ;;  %v233_v32 = vunpack.c.l.bf16 %v253_v22  ;;  %v61_v34 = vsel %vm53_vm1, %v229_v17, 0.0  ;;  %v82_v35 = vadd.f32 %v81_v30, %v80_v27  ;;  %s206_s10 = sshll.u32 %s310_s0, 4  ;;  %s207_s10 = int_to_ptr.vmem [resolvable:$true] %s206_s10 }
   0xd   :  { %v246_v37 = vunpack.c.h.bf16 %v256_v18  ;;  %v85_v39 = vsel %vm53_vm1, %v242_v23, 0.0  ;;  %v234_v40 = vunpack.c.h.bf16 %v253_v22  ;;  %v63_v41 = vsel %vm53_vm1, %v230_v25, 0.0  ;;  %s284_s11 = scalar_lea.vmem %s207_s10, 32  ;;  %p289_p1 = scmp.lt.s32.totalorder %s207_s10, %s207_s10 }
   0xe   :  { %270 = vmatpush3.bf16.msra.mxu0 %v281_v16  ;;  %v60_v38 = vadd.f32 %v59_v26, %v58_v29  ;;  %v84_v42 = vadd.f32 %v83_v31, %v82_v35  ;;  %v249_v44 = vunpack.c.l.bf16 %v257_v33  ;;  %v87_v46 = vsel %vm53_vm1, %v245_v28, 0.0  ;;  %p285_p0 = scmp.ne.s32.totalorder %s207_s10, %s284_s11  ;;  %p290_p2 = scmp.lt.s32.totalorder %s284_s11, %s284_s11 }
   0xf   :  { %v41_v47 = vunpack.c.l.bf16 %v21_v36  ;;  %v65_v48 = vsel %vm53_vm1, %v233_v32, 0.0  ;;  %v250_v50 = vunpack.c.h.bf16 %v257_v33  ;;  %v89_v52 = vsel %vm53_vm1, %v246_v37, 0.0 }
  0x10   :  { %v62_v45 = vadd.f32 %v61_v34, %v60_v38  ;;  %v86_v49 = vadd.f32 %v85_v39, %v84_v42  ;;  %v42_v54 = vunpack.c.l.bf16 %v22_v43  ;;  %v67_v55 = vsel %vm53_vm1, %v234_v40, 0.0  ;;  %p291_p3 = por %p290_p2, %p289_p1 }
  0x11   :  { %v51_v57 = vunpack.c.h.bf16 %v21_v36  ;;  %vm71_vm2 = vcmask 520192   ;;  %v91_v59 = vsel %vm53_vm1, %v249_v44, 0.0  ;;  %v69_v60 = vsel %vm53_vm1, %v41_v47, 0.0 }
  0x12   :  { %v64_v51 = vadd.f32 %v63_v41, %v62_v45  ;;  %v88_v56 = vadd.f32 %v87_v46, %v86_v49  ;;  %v52_v62 = vunpack.c.l.bf16 %v32_v53  ;;  %v93_v0 = vsel %vm53_vm1, %v250_v50, 0.0  ;;  %p292_p4 = pnand %p291_p3, %p285_p0 }
  0x13   :  { %v72_v1 = vsel %vm71_vm2, %v42_v54, 0.0  ;;  %v95_v4 = vsel %vm53_vm1, %v51_v57, 0.0  ;;  %vm121_vm3 = vcmask 1041409   ;;  %vm192_vm4 = vcmask 254976  }
  0x14   :  { %v66_v58 = vadd.f32 %v65_v48, %v64_v51  ;;  %v90_v61 = vadd.f32 %v89_v52, %v88_v56  ;;  %v97_v7 = vsel %vm71_vm2, %v52_v62, 0.0 }
  0x16   :  { %v68_v63 = vadd.f32 %v67_v55, %v66_v58  ;;  %v92_v2 = vadd.f32 %v91_v59, %v90_v61 }
  0x18   :  { %v70_v3 = vadd.f32 %v69_v60, %v68_v63  ;;  %v94_v5 = vadd.f32 %v93_v0, %v92_v2 }
  0x1a   :  { %v73_v6 = vadd.f32 %v72_v1, %v70_v3  ;;  %v96_v8 = vadd.f32 %v95_v4, %v94_v5 }
  0x1c   :  { %v74_v9 = vrot.slane %v73_v6, 4  ;;  %v98_v10 = vadd.f32 %v97_v7, %v96_v8 }
  0x1e   :  { %v75_v11 = vadd.f32 %v74_v9, %v73_v6  ;;  %v99_v12 = vrot.slane %v98_v10, 4 }
  0x20   :  { %v76_v13 = vrot.slane %v75_v11, 2  ;;  %v100_v14 = vadd.f32 %v99_v12, %v98_v10 }
  0x22   :  { %v77_v15 = vadd.f32 %v76_v13, %v75_v11  ;;  %v101_v16 = vrot.slane %v100_v14, 2 }
  0x24   :  { %v78_v17 = vrot.slane %v77_v15, 1  ;;  %v102_v18 = vadd.f32 %v101_v16, %v100_v14 }
  0x26   :  { %v79_v19 = vadd.f32 %v78_v17, %v77_v15  ;;  %v103_v20 = vrot.slane %v102_v18, 1 }
  0x28   :  { %v105_v21 = vmul.f32 0.012987013, %v79_v19  ;;  %v104_v22 = vadd.f32 %v103_v20, %v102_v18 }
  0x2a   :  { %v107_v23 = vpack.c.bf16 %v105_v21, %v105_v21  ;;  %v106_v24 = vmul.f32 0.012987013, %v104_v22 }
  0x2c   :  { %v108_v25 = vpack.c.bf16 %v106_v24, %v106_v24  ;;  %v119_v26 = vunpack.c.l.b16 %v107_v23 }
  0x2e   :  { %v120_v27 = vunpack.c.l.b16 %v108_v25 }
  0x30   :  { %v122_v28 = vsel %vm121_vm3, %v120_v27, %v119_v26 }
  0x31   :  { %v123_v29 = vpack.c.b16 %v122_v28, %v122_v28 }
  0x33   :  { %272 = vmatmul.mubr.msk.bf16.vlgmr.msra.gmra.mrb[0].mxu0 %vm53_vm1, %v123_v29 }
 0x106   :  { %v185_v30 = vpop.f32.mrb[0].mxu0 }
 0x107   :  { %v273_v31 = vpop.f32.mrb[1].mxu0  ;;  %v191_v32 = vmul.f32 %v185_v30, %v185_v30 }
 0x108   :  { %v188_v33 = vpop.f32.mrb[2].mxu0 }
 0x109   :  { %v274_v34 = vpop.f32.mrb[3].mxu0  ;;  %v193_v35 = vsel %vm192_vm4, %v191_v32, 0.0 }
 0x10a   :  { %194 = vadd.xlane.f32.xlu0 %v193_v35 }
 0x197   :  { %v195_v36 = vpop.xlane.xlu0 %194 }
 0x198   :  { %v196_v37 = vadd.f32 1e-06, %v195_v36 }
 0x19a   :  { %282 = vrsqrt.f32 %v196_v37 }
 0x1a4   :  { %v283_v38 = vpop.eup %282 }
 0x1a5   :  { %v198_v39 = vmul.f32 %v283_v38, %v185_v30 }
 0x1a7   :  { %199 = vst.msk [vmem:[#allocation2] sm:$0x3] %vm192_vm4, %v198_v39 }
 0x1a8   :  { %295 = shalt.err (!%p292_p4)
}
 0x1a9   :  { %s296_s14 = scalar_lea.hbm %s404_s2, 32 }
 0x1aa   :  { %p297_p5 = scmp.ne.s32.totalorder %s404_s2, %s296_s14  ;;  %p300_p6 = scmp.lt.u32.totalorder %s296_s14, %s404_s2 }
 0x1ac   :  { %p302_p7 = pnand %p300_p6, %p297_p5 }
 0x1ae   :  { %305 = shalt.err (!%p302_p7)
}
 0x1af   :  { %209 = dma.vmem_to_hbm [thread:$0]  %s207_s10, 32, %s404_s2, [#allocation3]  }
 0x1b0   :  { %306 = dma.done.wait [#allocation3], 32  }
 0x1b1   :  { %307 = vsyncadd [#allocation3], 4294967264 }
 0x1b2   :  { %213 = vsyncpa [#allocation3], 1 }

</bundles_post_ra>
